<compile_context>
chip_gen: v7x
topology: tpu7x:2x2x1
jax: 0.10.0
libtpu: 0.0.40
codegen_flags: <defaults>
</compile_context>

<pallas_src>
import functools
import math

import jax
import jax.numpy as jnp
from jax import lax
from jax.experimental import pallas as pl
from jax.experimental.pallas import tpu as pltpu


def _round_up(x, m):
    return ((x + m - 1) // m) * m


def _infonce_kernel(fr_ref, fcT_ref, lab_row_ref, lab_col_ref, cnt_ref,
                    out_ref, acc_exp, acc_msim,
                    *, inv_temp, n_valid, block_n, mask_last_tile, use_bf16_exp):
    k = pl.program_id(1)
    last = pl.num_programs(1) - 1

    @pl.when(k == 0)
    def _init():
        acc_exp[...] = jnp.zeros_like(acc_exp)
        acc_msim[...] = jnp.zeros_like(acc_msim)

    # (Tm, Tn) cosine tile on the MXU: unit-norm bf16 operands prepared in the
    # wrapper, column operand already in native (K, N) layout, f32 accumulate.
    cos = lax.dot_general(fr_ref[...], fcT_ref[...],
                          (((1,), (0,)), ((), ())),
                          preferred_element_type=jnp.float32)
    # cos <= 1, so shift by the bound and apply 1/temperature after the f32
    # matmul; the shift cancels exactly in log_prob and keeps exp() in range.
    sim = (cos - 1.0) * inv_temp

    # Positive-pair mask from (Tm,1) row labels and (1,Tn) column labels.
    # Padded columns carry a sentinel label, so `pos` already excludes them.
    pos = lab_row_ref[...] == lab_col_ref[...]

    def _accumulate(mask_cols):
        if mask_cols:
            col_ids = k * block_n + lax.broadcasted_iota(jnp.int32, (1, block_n), 1)
            s = jnp.where(col_ids < n_valid, sim, -1e9)
        else:
            s = sim
        if use_bf16_exp:
            e = jnp.exp(s.astype(jnp.bfloat16)).astype(jnp.float32)
        else:
            e = jnp.exp(s)
        acc_exp[...] += jnp.sum(e, axis=1, keepdims=True)
        acc_msim[...] += jnp.sum(jnp.where(pos, sim, 0.0), axis=1, keepdims=True)

    if mask_last_tile:
        # Only the final column tile contains padded columns.
        @pl.when(k == last)
        def _masked():
            _accumulate(True)

        @pl.when(k != last)
        def _fast():
            _accumulate(False)
    else:
        _accumulate(False)

    @pl.when(k == last)
    def _finalize():
        cnt = cnt_ref[...]                                 # precomputed positives/row
        inv_cnt = pl.reciprocal(cnt, approx=False)
        # mean_j mask*log_prob = (sum mask*sim' - cnt * log(sum exp sim')) / cnt
        out_ref[...] = (acc_msim[...] - cnt * jnp.log(acc_exp[...])) * inv_cnt


def infonce_loss(features, labels, temperature=0.07, *, block_m=512, block_n=512):
    """features: (N, D) float, labels: (N,) int -> scalar float32 loss."""
    n, d = features.shape
    feats = features.astype(jnp.float32)
    labels = labels.reshape(n).astype(jnp.int32)

    # Normalize once (F.normalize semantics: x / max(||x||, 1e-12)); bf16 stream.
    norm = jnp.sqrt(jnp.sum(feats * feats, axis=1, keepdims=True))
    feats_n = (feats / jnp.maximum(norm, 1e-12)).astype(jnp.bfloat16)

    # Per-row positive counts (diagonal included), computed without an NxN mask.
    _, inv, counts = jnp.unique(labels, return_inverse=True, return_counts=True,
                                size=n)
    pos_cnt = counts[inv.reshape(-1)].astype(jnp.float32)

    if n <= max(block_m, block_n):
        n_pad = _round_up(n, 8)
        tm = tn = n_pad                       # single tile per axis
    else:
        tm, tn = block_m, block_n
        lcm = (block_m * block_n) // math.gcd(block_m, block_n)
        n_pad = _round_up(n, lcm)             # block_m == block_n -> lcm == tile
    pad = n_pad - n

    sentinel = labels.min() - 1               # never equals any real label
    if pad:
        feats_n = jnp.pad(feats_n, ((0, pad), (0, 0)))
        labels_p = jnp.concatenate([labels, jnp.full((pad,), sentinel, labels.dtype)])
        pos_cnt = jnp.concatenate([pos_cnt, jnp.ones((pad,), jnp.float32)])
    else:
        labels_p = labels

    feats_t = feats_n.T                       # (D, N) column operand, native (K,N)
    lab_row = labels_p.reshape(n_pad, 1)
    lab_col = labels_p.reshape(1, n_pad)
    cnt_col = pos_cnt.reshape(n_pad, 1)

    # Generation-aware knobs: bf16 exp only where the EUP is bf16-capable,
    # conservative VMEM cap on v7x (64 MiB/TC), roomier on v5e/v6e (128 MiB).
    kind = jax.devices()[0].device_kind.lower()
    use_bf16_exp = ("v6" in kind) or ("v7" in kind) or ("7x" in kind)
    vmem_limit = (96 if ("v5" in kind or "v6" in kind) else 48) * 1024 * 1024

    grid = (n_pad // tm, n_pad // tn)
    kernel = functools.partial(
        _infonce_kernel, inv_temp=float(1.0 / temperature), n_valid=n,
        block_n=tn, mask_last_tile=(pad > 0), use_bf16_exp=use_bf16_exp)

    per_row = pl.pallas_call(
        kernel,
        out_shape=jax.ShapeDtypeStruct((n_pad, 1), jnp.float32),
        grid=grid,
        in_specs=[
            pl.BlockSpec((tm, d), lambda i, k: (i, 0)),   # row features (resident)
            pl.BlockSpec((d, tn), lambda i, k: (0, k)),   # streamed column features
            pl.BlockSpec((tm, 1), lambda i, k: (i, 0)),   # row labels
            pl.BlockSpec((1, tn), lambda i, k: (0, k)),   # column labels
            pl.BlockSpec((tm, 1), lambda i, k: (i, 0)),   # per-row positive counts
        ],
        out_specs=pl.BlockSpec((tm, 1), lambda i, k: (i, 0)),
        scratch_shapes=[pltpu.VMEM((tm, 1), jnp.float32)] * 2,
        compiler_params=pltpu.CompilerParams(
            dimension_semantics=("parallel", "arbitrary"),
            vmem_limit_bytes=vmem_limit),
    )(feats_n, feats_t, lab_row, lab_col, cnt_col)

    # Drop padded rows; loss = -mean over rows of mean log-prob over positives.
    return -jnp.mean(per_row[:n, 0])


if __name__ == "__main__":
    key = jax.random.PRNGKey(0)
    kf, kl = jax.random.split(key)

    N, D = 8, 32  # batch of 8 feature vectors, hidden dim 32
    features = jax.random.normal(kf, (N, D), dtype=jnp.float32)
    labels = jax.random.randint(kl, (N,), 0, 3, dtype=jnp.int32)

    loss = infonce_loss(features, labels, temperature=0.07)
    jax.block_until_ready(loss)

    # Pure-JAX f32 reference of the PyTorch InfoNCELoss forward.
    f = features / jnp.maximum(
        jnp.sqrt(jnp.sum(features * features, axis=1, keepdims=True)), 1e-12)
    sim = (f @ f.T) / 0.07
    m = (labels[:, None] == labels[None, :]).astype(jnp.float32)
    logp = sim - jnp.log(jnp.sum(jnp.exp(sim), axis=1, keepdims=True))
    ref = -jnp.mean(jnp.sum(m * logp, axis=1) / jnp.sum(m, axis=1))

    # Kernel feeds the MXU in bf16 -> compare at bf16-level tolerance.
    assert jnp.allclose(loss, ref, rtol=3e-2, atol=5e-2), (loss, ref)

    print("KERNEL_OK")
</pallas_src>

<mosaic_0001>
module attributes {stable_mosaic.version = 11 : i64} {
  func.func @_infonce_kernel(%arg0: i32, %arg1: i32, %arg2: memref<8x32xbf16, #tpu.memory_space<vmem>>, %arg3: memref<32x8xbf16, #tpu.memory_space<vmem>>, %arg4: memref<8x1xi32, #tpu.memory_space<vmem>>, %arg5: memref<1x8xi32, #tpu.memory_space<vmem>>, %arg6: memref<8x1xf32, #tpu.memory_space<vmem>>, %arg7: memref<8x1xf32, #tpu.memory_space<vmem>>, %arg8: memref<8x1xf32, #tpu.memory_space<vmem>>, %arg9: memref<8x1xf32, #tpu.memory_space<vmem>>) attributes {dimension_semantics = [#tpu.dimension_semantics<parallel>, #tpu.dimension_semantics<arbitrary>], iteration_bounds = array<i64: 1, 1>, scalar_prefetch = 0 : i64, scratch_operands = 2 : i64, tpu.core_type = #tpu.core_type<tc>, window_params = [{transform_indices = @transform_0, window_bounds = array<i64: 8, 32>}, {transform_indices = @transform_1, window_bounds = array<i64: 32, 8>}, {transform_indices = @transform_2, window_bounds = array<i64: 8, 1>}, {transform_indices = @transform_3, window_bounds = array<i64: 1, 8>}, {transform_indices = @transform_4, window_bounds = array<i64: 8, 1>}, {transform_indices = @transform_5, window_bounds = array<i64: 8, 1>}]} {
    %c0_i32 = arith.constant 0 : i32
    %0 = arith.cmpi eq, %arg1, %c0_i32 : i32
    %1 = arith.extui %0 : i1 to i32
    %c0_i32_0 = arith.constant 0 : i32
    %2 = arith.cmpi ne, %1, %c0_i32_0 : i32
    scf.if %2 {
      %cst_23 = arith.constant 0.000000e+00 : f32
      %31 = vector.broadcast %cst_23 : f32 to vector<8x1xf32>
      %c0_24 = arith.constant 0 : index
      %c0_25 = arith.constant 0 : index
      %32 = vector.load %arg8[%c0_24, %c0_25] : memref<8x1xf32, #tpu.memory_space<vmem>>, vector<8x1xf32>
      tpu.vector_store %arg8[%c0_24, %c0_25], %31 {strides = array<i32>} : memref<8x1xf32, #tpu.memory_space<vmem>>, vector<8x1xf32>,
      %cst_26 = arith.constant 0.000000e+00 : f32
      %33 = vector.broadcast %cst_26 : f32 to vector<8x1xf32>
      %c0_27 = arith.constant 0 : index
      %c0_28 = arith.constant 0 : index
      %34 = vector.load %arg9[%c0_27, %c0_28] : memref<8x1xf32, #tpu.memory_space<vmem>>, vector<8x1xf32>
      tpu.vector_store %arg9[%c0_27, %c0_28], %33 {strides = array<i32>} : memref<8x1xf32, #tpu.memory_space<vmem>>, vector<8x1xf32>,
    } else {
    }
    %c0 = arith.constant 0 : index
    %c0_1 = arith.constant 0 : index
    %3 = vector.load %arg2[%c0, %c0_1] : memref<8x32xbf16, #tpu.memory_space<vmem>>, vector<8x32xbf16>
    %c0_2 = arith.constant 0 : index
    %c0_3 = arith.constant 0 : index
    %4 = vector.load %arg3[%c0_2, %c0_3] : memref<32x8xbf16, #tpu.memory_space<vmem>>, vector<32x8xbf16>
    %cst = arith.constant dense<0.000000e+00> : vector<8x8xf32>
    %5 = tpu.matmul %3, %4, %cst {dimension_numbers = #tpu.dot_dimension_numbers<[1], [0], [0], [1], [0, 0, 1, 1], [], []>} : vector<8x32xbf16>, vector<32x8xbf16>, vector<8x8xf32> -> vector<8x8xf32>
    %cst_4 = arith.constant 1.000000e+00 : f32
    %6 = vector.broadcast %cst_4 : f32 to vector<8x8xf32>
    %7 = arith.subf %5, %6 : vector<8x8xf32>
    %cst_5 = arith.constant 14.2857141 : f32
    %8 = vector.broadcast %cst_5 : f32 to vector<8x8xf32>
    %9 = arith.mulf %7, %8 : vector<8x8xf32>
    %c0_6 = arith.constant 0 : index
    %c0_7 = arith.constant 0 : index
    %10 = vector.load %arg4[%c0_6, %c0_7] : memref<8x1xi32, #tpu.memory_space<vmem>>, vector<8x1xi32>
    %c0_8 = arith.constant 0 : index
    %c0_9 = arith.constant 0 : index
    %11 = vector.load %arg5[%c0_8, %c0_9] : memref<1x8xi32, #tpu.memory_space<vmem>>, vector<1x8xi32>
    %12 = vector.broadcast %10 : vector<8x1xi32> to vector<8x8xi32>
    %13 = vector.broadcast %11 : vector<1x8xi32> to vector<8x8xi32>
    %14 = arith.cmpi eq, %12, %13 : vector<8x8xi32>
    %15 = math.exp %9 : vector<8x8xf32>
    %c0_10 = arith.constant 0 : index
    %c0_11 = arith.constant 0 : index
    %16 = vector.load %arg8[%c0_10, %c0_11] : memref<8x1xf32, #tpu.memory_space<vmem>>, vector<8x1xf32>
    %cst_12 = arith.constant dense<0.000000e+00> : vector<8xf32>
    %17 = vector.multi_reduction <add>, %15, %cst_12 [1] : vector<8x8xf32> to vector<8xf32>
    %18 = vector.shape_cast %17 : vector<8xf32> to vector<8x1xf32>
    %19 = arith.addf %16, %18 : vector<8x1xf32>
    %c0_13 = arith.constant 0 : index
    %c0_14 = arith.constant 0 : index
    %20 = vector.load %arg8[%c0_13, %c0_14] : memref<8x1xf32, #tpu.memory_space<vmem>>, vector<8x1xf32>
    tpu.vector_store %arg8[%c0_13, %c0_14], %19 {strides = array<i32>} : memref<8x1xf32, #tpu.memory_space<vmem>>, vector<8x1xf32>,
    %c0_15 = arith.constant 0 : index
    %c0_16 = arith.constant 0 : index
    %21 = vector.load %arg9[%c0_15, %c0_16] : memref<8x1xf32, #tpu.memory_space<vmem>>, vector<8x1xf32>
    %cst_17 = arith.constant 0.000000e+00 : f32
    %22 = vector.broadcast %cst_17 : f32 to vector<8x8xf32>
    %23 = arith.select %14, %9, %22 : vector<8x8xi1>, vector<8x8xf32>
    %cst_18 = arith.constant dense<0.000000e+00> : vector<8xf32>
    %24 = vector.multi_reduction <add>, %23, %cst_18 [1] : vector<8x8xf32> to vector<8xf32>
    %25 = vector.shape_cast %24 : vector<8xf32> to vector<8x1xf32>
    %26 = arith.addf %21, %25 : vector<8x1xf32>
    %c0_19 = arith.constant 0 : index
    %c0_20 = arith.constant 0 : index
    %27 = vector.load %arg9[%c0_19, %c0_20] : memref<8x1xf32, #tpu.memory_space<vmem>>, vector<8x1xf32>
    tpu.vector_store %arg9[%c0_19, %c0_20], %26 {strides = array<i32>} : memref<8x1xf32, #tpu.memory_space<vmem>>, vector<8x1xf32>,
    %c0_i32_21 = arith.constant 0 : i32
    %28 = arith.cmpi eq, %arg1, %c0_i32_21 : i32
    %29 = arith.extui %28 : i1 to i32
    %c0_i32_22 = arith.constant 0 : i32
    %30 = arith.cmpi ne, %29, %c0_i32_22 : i32
    scf.if %30 {
      %c0_23 = arith.constant 0 : index
      %c0_24 = arith.constant 0 : index
      %31 = vector.load %arg6[%c0_23, %c0_24] : memref<8x1xf32, #tpu.memory_space<vmem>>, vector<8x1xf32>
      %32 = tpu.reciprocal %31 : vector<8x1xf32> -> vector<8x1xf32>
      %c0_25 = arith.constant 0 : index
      %c0_26 = arith.constant 0 : index
      %33 = vector.load %arg9[%c0_25, %c0_26] : memref<8x1xf32, #tpu.memory_space<vmem>>, vector<8x1xf32>
      %c0_27 = arith.constant 0 : index
      %c0_28 = arith.constant 0 : index
      %34 = vector.load %arg8[%c0_27, %c0_28] : memref<8x1xf32, #tpu.memory_space<vmem>>, vector<8x1xf32>
      %35 = math.log %34 : vector<8x1xf32>
      %36 = arith.mulf %31, %35 : vector<8x1xf32>
      %37 = arith.subf %33, %36 : vector<8x1xf32>
      %38 = arith.mulf %37, %32 : vector<8x1xf32>
      %c0_29 = arith.constant 0 : index
      %c0_30 = arith.constant 0 : index
      %39 = vector.load %arg7[%c0_29, %c0_30] : memref<8x1xf32, #tpu.memory_space<vmem>>, vector<8x1xf32>
      tpu.vector_store %arg7[%c0_29, %c0_30], %38 {strides = array<i32>} : memref<8x1xf32, #tpu.memory_space<vmem>>, vector<8x1xf32>,
    } else {
    }
    return
  }
  func.func @transform_0(%arg0: i32, %arg1: i32) -> (i32, i32) {
    %c0_i32 = arith.constant 0 : i32
    %c0_i32_0 = arith.constant 0 : i32
    return %arg0, %c0_i32 : i32, i32
  }
  func.func @transform_1(%arg0: i32, %arg1: i32) -> (i32, i32) {
    %c0_i32 = arith.constant 0 : i32
    %c0_i32_0 = arith.constant 0 : i32
    return %c0_i32, %arg1 : i32, i32
  }
  func.func @transform_2(%arg0: i32, %arg1: i32) -> (i32, i32) {
    %c0_i32 = arith.constant 0 : i32
    %c0_i32_0 = arith.constant 0 : i32
    return %arg0, %c0_i32 : i32, i32
  }
  func.func @transform_3(%arg0: i32, %arg1: i32) -> (i32, i32) {
    %c0_i32 = arith.constant 0 : i32
    %c0_i32_0 = arith.constant 0 : i32
    return %c0_i32, %arg1 : i32, i32
  }
  func.func @transform_4(%arg0: i32, %arg1: i32) -> (i32, i32) {
    %c0_i32 = arith.constant 0 : i32
    %c0_i32_0 = arith.constant 0 : i32
    return %arg0, %c0_i32 : i32, i32
  }
  func.func @transform_5(%arg0: i32, %arg1: i32) -> (i32, i32) {
    %c0_i32 = arith.constant 0 : i32
    %c0_i32_0 = arith.constant 0 : i32
    return %arg0, %c0_i32 : i32, i32
  }
}

</mosaic_0001>

<bundles_post_ra>
// kernel: tpu_custom_call.1
= control target key start
LH: loop header
LB: loop body
LE: loop exit
PB: predicated region body
PF: predicated region fallthrough
CT: control target
= control target key end

     0   :  { %v163_v0 = vmov 0.0   ;;  %vm164_vm0 = vmmov 0   ;;  %v165_v2 = vmov 0   ;;  %vm45_vm1 = vcmask 261120   ;;  %s222_s1 = inlined_call_operand.vmem [shape: bf16[32,8], index: 1, kind: input, shape index: {}]   ;;  %s223_s2 = inlined_call_operand.vmem [shape: s32[8,1], index: 2, kind: input, shape index: {}]   ;;  %s224_s0 = inlined_call_operand.vmem [shape: bf16[8,32], index: 0, kind: input, shape index: {}]   ;;  %s225_s3 = inlined_call_operand.vmem [shape: s32[1,8], index: 3, kind: input, shape index: {}]   ;;  %s226_s4 = inlined_call_operand.vmem [shape: f32[8,1], index: 4, kind: input, shape index: {}]   ;;  %s227_s5 = inlined_call_operand.vmem [shape: f32[8,1], index: 5, kind: output, shape index: {}]  }
   0x1   :  { %143 = vmatprep.subr.bf16.mxu0 %v163_v0  ;;  %v155_v1 = vld [vmem:[%s222_s1] sm:$0xff]   ;;  %147 = vmatprep.mubr.msk.bf16.mxu0 %vm164_vm0, %v163_v0  ;;  %v156_v3 = vld [vmem:[%s222_s1 + $0x8] sm:$0xff]   ;;  %vm25_vm2 = vcmask 7168   ;;  %vm104_vm4 = vcmask 64512  }
   0x2   :  { %154 = vset.pattern.permute.xlu0 %v165_v2  ;;  %144 = vmatpush3.bf16.msra.mxu0 %v155_v1  ;;  %v91_v4 = vld [vmem:[%s223_s2] sm:$0xff]  ;;  %27 = vst.msk [vmem:[#allocation3] sm:$0xff] %vm25_vm2, %v163_v0  ;;  %26 = vst.msk [vmem:[#allocation2] sm:$0xff] %vm25_vm2, %v163_v0 }
   0x3   :  { %145 = vmatprep.subr.bf16.mxu0 %v163_v0  ;;  %94 = vperm.xlu0 %154, %v91_v4   ;;  %v28_v5 = vld [vmem:[%s224_s0] sm:$0xf] }
   0x4   :  { %v139_v6 = vld [vmem:[%s225_s3] ss:$0 sm:$0xff] }
   0x5   :  { %v121_v26 = vld [vmem:[%s226_s4] sm:$0xff] }
   0x6   :  { %146 = vmatpush3.bf16.msra.mxu0 %v156_v3 }
   0x9   :  { %148 = vmatmul.mubr.msk.bf16.vlgmr.msra.gmra.mrb[0].mxu0 %vm45_vm1, %v28_v5  ;;  %v111_v19 = vld [vmem:[#allocation3] sm:$0xff]  ;;  %v103_v22 = vld [vmem:[#allocation2] sm:$0xff] }
  0x82   :  { %v95_v7 = vpop.permute.xlu0 %94 }
  0x83   :  { %vm100_vm3 = vcmp.eq.s32.totalorder %v95_v7, %v139_v6 }
  0xdc   :  { %v83_v8 = vpop.f32.mrb[0].mxu0 }
  0xdd   :  { %v138_v9 = vadd.f32 -1.0, %v83_v8  ;;  %v149_v10 = vpop.f32.mrb[1].mxu0 }
  0xde   :  { %v86_v11 = vpop.f32.mrb[2].mxu0 }
  0xdf   :  { %v90_v12 = vmul.f32 14.285714, %v138_v9  ;;  %v150_v13 = vpop.f32.mrb[3].mxu0 }
  0xe1   :  { %v101_v14 = vmul.f32 1.442695, %v90_v12  ;;  %v112_v15 = vsel %vm100_vm3, %v90_v12, 0.0 }
  0xe2   :  { %v113_v16 = vsel %vm104_vm4, %v112_v15, 0.0 }
  0xe3   :  { %157 = vpow2.f32 %v101_v14  ;;  %114 = vadd.xlane.f32.xlu1 %v113_v16 }
  0xed   :  { %v158_v17 = vpop.eup %157 }
  0xee   :  { %v105_v18 = vsel %vm104_vm4, %v158_v17, 0.0 }
  0xef   :  { %106 = vadd.xlane.f32.xlu0 %v105_v18 }
 0x170   :  { %v115_v20 = vpop.xlane.xlu1 %114 }
 0x171   :  { %v116_v21 = vadd.f32 %v115_v20, %v111_v19 }
 0x173   :  { %117 = vst.msk [vmem:[#allocation3] sm:$0xff] %vm25_vm2, %v116_v21 }
 0x17a   :  { %v123_v31 = vld [vmem:[#allocation3] sm:$0xff] }
 0x17c   :  { %v107_v23 = vpop.xlane.xlu0 %106 }
 0x17d   :  { %v108_v24 = vadd.f32 %v107_v23, %v103_v22 }
 0x17f   :  { %110 = vst.msk [vmem:[#allocation2] sm:$0xff] %vm25_vm2, %v108_v24 }
 0x186   :  { %v124_v25 = vld [vmem:[#allocation2] sm:$0xff] }
 0x187   :  { %159 = vlog2.f32 %v124_v25 }
 0x188   :  { %161 = vrcp.f32 %v121_v26 }
 0x191   :  { %v160_v27 = vpop.eup %159 }
 0x192   :  { %v126_v28 = vmul.f32 0.6931472, %v160_v27  ;;  %v162_v30 = vpop.eup %161 }
 0x194   :  { %v127_v29 = vmul.f32 %v126_v28, %v121_v26 }
 0x196   :  { %v128_v32 = vsub.f32 %v123_v31, %v127_v29 }
 0x198   :  { %v129_v33 = vmul.f32 %v162_v30, %v128_v32 }
 0x19a   :  { %130 = vst.msk [vmem:[%s227_s5] sm:$0xff] %vm25_vm2, %v129_v33 }

</bundles_post_ra>
